<compile_context>
chip_gen: v7x
topology: tpu7x:2x2x1
jax: 0.10.0
libtpu: 0.0.40
codegen_flags: <defaults>
</compile_context>

<pallas_src>
import numpy as np
import jax
import jax.numpy as jnp
from jax.experimental import pallas as pl
from jax.experimental.pallas import tpu as pltpu


# --------------------------------------------------------------------------
# Host-side (trace-time) positional-encoding table: computed exactly once.
# --------------------------------------------------------------------------
def _positional_encoding_1d(S, C, dtype):
    channels_pad = int(np.ceil(C / 2) * 2)
    inv_freq = 1.0 / (10000.0 ** (np.arange(0, channels_pad, 2, dtype=np.float64)
                                  / channels_pad))
    pos = np.arange(S, dtype=np.float64)
    sin_inp = np.outer(pos, inv_freq)                    # (S, channels_pad // 2)
    emb = np.zeros((S, channels_pad), dtype=np.float32)
    emb[:, 0::2] = np.sin(sin_inp)                       # interleave sin/cos
    emb[:, 1::2] = np.cos(sin_inp)
    return jnp.asarray(emb[:, :C], dtype=dtype)          # (S, C)


def _pick_tile(total, unit, cap):
    """Largest multiple of `unit` that divides `total` and is <= cap, else `total`
    (full extent, which is always a legal block dim)."""
    if total <= cap:
        return total
    t = (cap // unit) * unit
    while t >= unit:
        if total % t == 0:
            return t
        t -= unit
    return total


# --------------------------------------------------------------------------
# Kernels: pure read-add-write (the PE tile is resident across the batch axis).
# --------------------------------------------------------------------------
def _add_pe_flat_kernel(x_ref, pe_ref, o_ref):
    # x_ref / o_ref: (TB, TF);  pe_ref: (1, TF) -> sublane broadcast over TB.
    o_ref[...] = x_ref[...] + pe_ref[...]


def _add_pe_3d_kernel(x_ref, pe_ref, o_ref):
    # x_ref / o_ref: (TB, TS, C);  pe_ref: (TS, C).
    pe = pe_ref[...]
    o_ref[...] = x_ref[...] + pe[None, :, :]


# --------------------------------------------------------------------------
# Wrapper
# --------------------------------------------------------------------------
def summer_pe1d(x, *, tile_elems=512 * 1024):
    """x: (B, S, C).  Returns x + PositionalEncoding1D(C)(x)."""
    B, S, C = x.shape
    pe = _positional_encoding_1d(S, C, x.dtype)          # (S, C), constant
    F = S * C

    if F % 128 == 0:
        # Lane-dense fast path: fold (S, C) -> F so the last dim is a multiple
        # of 128 (full-width stores), tile the flat axis + batch axis.
        x2 = x.reshape(B, F)
        pe2 = pe.reshape(1, F)

        TB = B if B <= 8 else _pick_tile(B, 8, 8)
        cap_f = max(128, (tile_elems // max(TB, 1)) // 128 * 128)
        TF = _pick_tile(F, 128, cap_f)
        grid = (F // TF, B // TB)                         # flat-tile outer, batch inner

        out = pl.pallas_call(
            _add_pe_flat_kernel,
            out_shape=jax.ShapeDtypeStruct((B, F), x.dtype),
            grid_spec=pltpu.PrefetchScalarGridSpec(
                num_scalar_prefetch=0,
                grid=grid,
                in_specs=[
                    pl.BlockSpec((TB, TF), lambda f, b: (b, f)),
                    # PE block index constant across the inner batch axis ->
                    # stays resident in VMEM, DMA'd only when the flat tile changes.
                    pl.BlockSpec((1, TF), lambda f, b: (0, f)),
                ],
                out_specs=pl.BlockSpec((TB, TF), lambda f, b: (b, f)),
            ),
            compiler_params=pltpu.CompilerParams(
                dimension_semantics=("parallel", "parallel")),
        )(x2, pe2)
        return out.reshape(B, S, C)

    # Fallback path (S*C not lane-aligned, e.g. odd C): keep (B, S, C) layout,
    # tile the sequence axis, full channel dim.
    total = B * S * C
    if total <= tile_elems:
        TB, TS = B, S
    else:
        TB = 1
        cap_s = max(8, (tile_elems // max(C, 1)) // 8 * 8)
        TS = _pick_tile(S, 8, cap_s)
    grid = (S // TS, B // TB)                             # seq-tile outer, batch inner

    return pl.pallas_call(
        _add_pe_3d_kernel,
        out_shape=jax.ShapeDtypeStruct((B, S, C), x.dtype),
        grid_spec=pltpu.PrefetchScalarGridSpec(
            num_scalar_prefetch=0,
            grid=grid,
            in_specs=[
                pl.BlockSpec((TB, TS, C), lambda s, b: (b, s, 0)),
                pl.BlockSpec((TS, C), lambda s, b: (s, 0)),
            ],
            out_specs=pl.BlockSpec((TB, TS, C), lambda s, b: (b, s, 0)),
        ),
        compiler_params=pltpu.CompilerParams(
            dimension_semantics=("parallel", "parallel")),
    )(x, pe)


# --------------------------------------------------------------------------
# Pure-JAX/numpy reference mirroring torch_encodings PositionalEncoding1D + Summer.
# --------------------------------------------------------------------------
def _reference(x):
    B, S, C = x.shape
    channels_pad = int(np.ceil(C / 2) * 2)
    inv_freq = 1.0 / (10000.0 ** (np.arange(0, channels_pad, 2, dtype=np.float32)
                                  / channels_pad))
    pos = np.arange(S, dtype=np.float32)
    sin_inp = np.einsum("i,j->ij", pos, inv_freq)               # (S, pad/2)
    emb = np.stack((np.sin(sin_inp), np.cos(sin_inp)), axis=-1)  # (S, pad/2, 2)
    emb = emb.reshape(S, channels_pad)[:, :C]                    # truncate to C
    pe = jnp.asarray(np.broadcast_to(emb[None], (B, S, C)), dtype=x.dtype)
    return x + pe


if __name__ == "__main__":
    key = jax.random.PRNGKey(0)

    # Primary test: lane-dense flat path (S*C = 256, multiple of 128).
    B, S, C = 2, 8, 32
    x = jax.random.normal(key, (B, S, C), dtype=jnp.float32)
    out = jax.block_until_ready(summer_pe1d(x))
    ref = _reference(x)
    assert out.shape == x.shape and out.dtype == x.dtype
    np.testing.assert_allclose(np.asarray(out), np.asarray(ref),
                               rtol=1e-5, atol=1e-5)

    # Secondary test: non-lane-aligned fallback path (odd-ish C).
    B2, S2, C2 = 2, 8, 30
    x2 = jax.random.normal(jax.random.PRNGKey(1), (B2, S2, C2), dtype=jnp.float32)
    out2 = jax.block_until_ready(summer_pe1d(x2))
    np.testing.assert_allclose(np.asarray(out2), np.asarray(_reference(x2)),
                               rtol=1e-5, atol=1e-5)

    print("KERNEL_OK")
</pallas_src>

<mosaic_0001>
module attributes {stable_mosaic.version = 11 : i64} {
  func.func @_add_pe_flat_kernel(%arg0: i32, %arg1: i32, %arg2: memref<2x256xf32, #tpu.memory_space<vmem>>, %arg3: memref<1x256xf32, #tpu.memory_space<vmem>>, %arg4: memref<2x256xf32, #tpu.memory_space<vmem>>) attributes {dimension_semantics = [#tpu.dimension_semantics<parallel>, #tpu.dimension_semantics<parallel>], iteration_bounds = array<i64: 1, 1>, scalar_prefetch = 0 : i64, scratch_operands = 0 : i64, tpu.core_type = #tpu.core_type<tc>, window_params = [{transform_indices = @transform_0, window_bounds = array<i64: 2, 256>}, {transform_indices = @transform_1, window_bounds = array<i64: 1, 256>}, {transform_indices = @transform_2, window_bounds = array<i64: 2, 256>}]} {
    %c0 = arith.constant 0 : index
    %c0_0 = arith.constant 0 : index
    %0 = vector.load %arg2[%c0, %c0_0] : memref<2x256xf32, #tpu.memory_space<vmem>>, vector<2x256xf32>
    %c0_1 = arith.constant 0 : index
    %c0_2 = arith.constant 0 : index
    %1 = vector.load %arg3[%c0_1, %c0_2] : memref<1x256xf32, #tpu.memory_space<vmem>>, vector<1x256xf32>
    %2 = vector.broadcast %1 : vector<1x256xf32> to vector<2x256xf32>
    %3 = arith.addf %0, %2 : vector<2x256xf32>
    %c0_3 = arith.constant 0 : index
    %c0_4 = arith.constant 0 : index
    %4 = vector.load %arg4[%c0_3, %c0_4] : memref<2x256xf32, #tpu.memory_space<vmem>>, vector<2x256xf32>
    tpu.vector_store %arg4[%c0_3, %c0_4], %3 {strides = array<i32>} : memref<2x256xf32, #tpu.memory_space<vmem>>, vector<2x256xf32>,
    return
  }
  func.func @transform_0(%arg0: i32, %arg1: i32) -> (i32, i32) {
    %c0_i32 = arith.constant 0 : i32
    return %arg1, %arg0 : i32, i32
  }
  func.func @transform_1(%arg0: i32, %arg1: i32) -> (i32, i32) {
    %c0_i32 = arith.constant 0 : i32
    %c0_i32_0 = arith.constant 0 : i32
    return %c0_i32, %arg0 : i32, i32
  }
  func.func @transform_2(%arg0: i32, %arg1: i32) -> (i32, i32) {
    %c0_i32 = arith.constant 0 : i32
    return %arg1, %arg0 : i32, i32
  }
}

</mosaic_0001>

<bundles_post_ra>
// kernel: tpu_custom_call.1
= control target key start
LH: loop header
LB: loop body
LE: loop exit
PB: predicated region body
PF: predicated region fallthrough
CT: control target
= control target key end

     0   :  { %7 = vsyncpa [#allocation3], 0  ;;  %s157_s0 = inlined_call_operand.hbm [shape: f32[2,256], index: 0, kind: input, shape index: {}]   ;;  %s158_s1 = inlined_call_operand.vmem [shape: f32[1,256], index: 1, kind: input, shape index: {}]   ;;  %s159_s2 = inlined_call_operand.hbm [shape: f32[2,256], index: 2, kind: output, shape index: {}]  }
   0x1   :  { %8 = vsyncpa [#allocation4], 0  ;;  %s112_s9 = smov [#allocation2]   ;;  %s64_s13 = scalar_lea.hbm %s157_s0, 64 }
   0x2   :  { %s15_s10 = sshll.u32 %s112_s9, 4  ;;  %p65_p0 = scmp.ne.s32.totalorder %s157_s0, %s64_s13  ;;  %s16_s10 = int_to_ptr.vmem [resolvable:$true] %s15_s10 }
   0x3   :  { %p68_p1 = scmp.lt.u32.totalorder %s64_s13, %s157_s0 }
   0x5   :  { %p70_p2 = pnand %p68_p1, %p65_p0 }
   0x7   :  { %73 = shalt.err (!%p70_p2)
}
   0x8   :  { %s74_s18 = scalar_lea.vmem %s16_s10, 64  ;;  %p79_p4 = scmp.lt.s32.totalorder %s16_s10, %s16_s10 }
   0x9   :  { %p75_p3 = scmp.ne.s32.totalorder %s16_s10, %s74_s18  ;;  %p80_p5 = scmp.lt.s32.totalorder %s74_s18, %s74_s18 }
   0xb   :  { %p81_p6 = por %p80_p5, %p79_p4 }
   0xd   :  { %p82_p7 = pnand %p81_p6, %p75_p3 }
   0xf   :  { %85 = shalt.err (!%p82_p7)
}
  0x10   :  { %18 = dma.hbm_to_vmem [thread:$0]  %s157_s0, 64, %s16_s10, [#allocation3]  }
  0x11   :  { %108 = dma.done.wait [#allocation3], 64  }
  0x12   :  { %109 = vsyncadd [#allocation3], 4294967232  ;;  %v27_v0 = vlaneseq  ;;  %v113_v1 = vmov 1983009808   ;;  %v25_v7 = vld [vmem:[%s158_s1] sm:$0x3] }
  0x13   :  { %v37_v2 = vunpack.c.l.s4 %v113_v1  ;;  %v24_v12 = vld [vmem:[#allocation2] sm:$0xf]  ;;  %s114_s23 = smov [#allocation5]  }
  0x14   :  { %v28_v3 = vshrl.u32 %v27_v0, 7  ;;  %s52_s0 = sshll.u32 %s114_s23, 4  ;;  %s53_s0 = int_to_ptr.vmem [resolvable:$true] %s52_s0 }
  0x15   :  { %v38_v6 = vunpack.c.0.s8 %v37_v2  ;;  %s86_s24 = scalar_lea.vmem %s53_s0, 64  ;;  %p91_p9 = scmp.lt.s32.totalorder %s53_s0, %s53_s0 }
  0x16   :  { %v29_v4 = vsub.s32 0, %v28_v3  ;;  %v33_v5 = vsub.s32 1, %v28_v3  ;;  %p87_p8 = scmp.ne.s32.totalorder %s53_s0, %s86_s24  ;;  %p92_p10 = scmp.lt.s32.totalorder %s86_s24, %s86_s24 }
  0x17   :  { %v41_v10 = vsub.s32 %v38_v6, %v28_v3 }
  0x18   :  { %v30_v8 = vrot.slane %v25_v7, %v29_v4  ;;  %v34_v9 = vrot.slane %v25_v7, %v33_v5  ;;  %p93_p11 = por %p92_p10, %p91_p9 }
  0x1a   :  { %v35_v11 = vcombine.low %v30_v8, %v34_v9  ;;  %p94_p12 = pnand %p93_p11, %p87_p8 }
  0x1c   :  { %v42_v13 = vrot.slane %v35_v11, %v41_v10 }
  0x1e   :  { %v44_v14 = vadd.f32 %v42_v13, %v24_v12 }
  0x20   :  { %45 = vst [vmem:[#allocation5] sm:$0xf] %v44_v14 }
  0x21   :  { %97 = shalt.err (!%p94_p12)
}
  0x22   :  { %s98_s26 = scalar_lea.hbm %s159_s2, 64 }
  0x23   :  { %p99_p13 = scmp.ne.s32.totalorder %s159_s2, %s98_s26  ;;  %p102_p0 = scmp.lt.u32.totalorder %s98_s26, %s159_s2 }
  0x25   :  { %p104_p1 = pnand %p102_p0, %p99_p13 }
  0x27   :  { %107 = shalt.err (!%p104_p1)
}
  0x28   :  { %55 = dma.vmem_to_hbm [thread:$0]  %s53_s0, 64, %s159_s2, [#allocation4]  }
  0x29   :  { %110 = dma.done.wait [#allocation4], 64  }
  0x2a   :  { %111 = vsyncadd [#allocation4], 4294967232 }
  0x2b   :  { %59 = vsyncpa [#allocation3], 1 }
  0x2c   :  { %60 = vsyncpa [#allocation4], 1 }

</bundles_post_ra>
